<compile_context>
chip_gen: v7x
topology: tpu7x:2x2x1
jax: 0.10.0
libtpu: 0.0.40
codegen_flags: <defaults>
</compile_context>

<pallas_src>
import numpy as np
import jax
import jax.numpy as jnp
from jax.experimental import pallas as pl
from jax.experimental.pallas import tpu as pltpu


# ----------------------------------------------------------------------------
# Bicubic (antialias) resize weight matrices (Pillow-compatible cubic, a=-0.5),
# matching torchvision Resize(bicubic, antialias=True).
# ----------------------------------------------------------------------------
def _cubic_filter(x, a=-0.5):
    x = abs(float(x))
    if x < 1.0:
        return ((a + 2.0) * x - (a + 3.0)) * x * x + 1.0
    elif x < 2.0:
        return (((x - 5.0) * x + 8.0) * x - 4.0) * a
    return 0.0


def bicubic_aa_weight_matrix(in_size, out_size):
    """Dense (out_size, in_size) resampling matrix for one spatial axis."""
    W = np.zeros((out_size, in_size), dtype=np.float64)
    scale = in_size / out_size
    interp_size = 4
    support = (interp_size / 2.0) * scale if scale >= 1.0 else interp_size / 2.0
    invscale = 1.0 / scale if scale >= 1.0 else 1.0
    for i in range(out_size):
        center = scale * (i + 0.5)
        xmin = max(int(center - support + 0.5), 0)
        xmax = min(int(center + support + 0.5), in_size)
        ws = np.array(
            [_cubic_filter((j + xmin - center + 0.5) * invscale)
             for j in range(xmax - xmin)],
            dtype=np.float64,
        )
        ws = ws / ws.sum()
        W[i, xmin:xmax] = ws
    return W.astype(np.float32)


# ----------------------------------------------------------------------------
# Kernel.
#   inv_std_ref : (C,) f32 in SMEM (scalar prefetch)   1/(std+1e-6)
#   nbias_ref   : (C,) f32 in SMEM (scalar prefetch)   -mean/(std+1e-6)
#   x_ref       : (NP, HW_in)   native dtype (e.g. uint8), lane-dense
#   k_ref       : (HW_in, HW_out) f32 fused resize matrix (1/255 folded in)
#   o_ref       : (NP, HW_out)  f32, lane-dense
# ----------------------------------------------------------------------------
def _rgb_preprocess_kernel(inv_std_ref, nbias_ref, x_ref, k_ref, o_ref):
    np_ = o_ref.shape[0]
    n_ch = inv_std_ref.shape[0]

    # u8 -> f32 cast happens in VMEM; 1/255 is folded into K.
    xf = x_ref[...].astype(jnp.float32)                              # (NP, HW_in)

    # Single tall MXU matmul: fused W-resize + H-resize.
    z = jnp.dot(xf, k_ref[...], preferred_element_type=jnp.float32)  # (NP, HW_out)

    # Per-plane channel params from SMEM: plane p -> channel p % C.
    plane0 = pl.program_id(0) * np_
    ch = (plane0 + jax.lax.broadcasted_iota(jnp.int32, (np_, 1), 0)) % n_ch
    scale = jnp.full((np_, 1), inv_std_ref[0], dtype=jnp.float32)
    bias = jnp.full((np_, 1), nbias_ref[0], dtype=jnp.float32)
    for c in range(1, n_ch):
        scale = jnp.where(ch == c, inv_std_ref[c], scale)
        bias = jnp.where(ch == c, nbias_ref[c], bias)

    # (resized - mean) / (std + 1e-6)  ==  resized * inv_std + (-mean * inv_std)
    o_ref[...] = z * scale + bias


# ----------------------------------------------------------------------------
# Planes-per-step heuristic — padding aware (lanes round to 128; u8 sublane
# tile is 32, f32 is 8).  Conservative 24 MiB working-set budget fits every
# generation (v7x has 64 MiB/TC physical).
# ----------------------------------------------------------------------------
def _ceil_to(x, m):
    return -(-x // m) * m


def _choose_planes_per_step(n_planes, hw_in, hw_out, in_itemsize, budget_bytes):
    lanes_in = _ceil_to(hw_in, 128)
    lanes_out = _ceil_to(hw_out, 128)
    per_plane = (
        2 * lanes_in * max(int(in_itemsize), 1)   # double-buffered input block (lane-padded)
        + 2 * lanes_out * 4                       # double-buffered output block
        + lanes_in * 4 + lanes_out * 4            # in-kernel f32 cast + matmul result
        + 2048                                    # iota / scale / bias vregs + slack
    )
    k_bytes = 2 * _ceil_to(hw_in, 8) * lanes_out * 4   # fused resize matrix (2 buffers)
    avail = max(budget_bytes - k_bytes, per_plane)
    np_ = int(max(1, min(n_planes, avail // per_plane)))
    if n_planes > 1:
        np_ = min(np_, -(-n_planes // 2))   # >=2 grid steps so v7x megacore can split planes
    if np_ >= n_planes:
        return n_planes                     # block == full plane axis (always tile-legal)
    if np_ >= 32:
        return (np_ // 32) * 32             # aligned for u8 (32,.) and f32 (8,.) tiles
    if np_ >= 8:
        return (np_ // 8) * 8
    return n_planes                         # too small to split into a legal sub-block


# ----------------------------------------------------------------------------
# Wrapper.
# ----------------------------------------------------------------------------
def rgb_preprocess(x, w_h, w_w, rgb_mean, rgb_std, *,
                   planes_per_step=None,
                   vmem_budget_bytes=24 << 20,
                   vmem_limit_bytes=48 << 20):
    """x: (B, C, H_in, W_in), any integer/float dtype (kept as-is; cast in VMEM).
    Returns (B, C, H_out, W_out) float32."""
    B, C, H_in, W_in = x.shape
    H_out, W_out = int(w_h.shape[0]), int(w_w.shape[0])
    HW_in, HW_out = H_in * W_in, H_out * W_out
    N = B * C

    # --- host-side constant folding ------------------------------------------
    wh = jnp.asarray(w_h, jnp.float32)                     # (H_out, H_in)
    ww = jnp.asarray(w_w, jnp.float32)                     # (W_out, W_in)
    # Fused separable-resize matrix with 1/255 folded in.
    k_mat = (jnp.einsum("oh,vw->hwov", wh, ww) * (1.0 / 255.0)
             ).reshape(HW_in, HW_out)                      # (HW_in, HW_out)

    inv_std = 1.0 / (jnp.asarray(rgb_std, jnp.float32).reshape(-1) + 1e-6)   # (C,)
    mean = jnp.asarray(rgb_mean, jnp.float32).reshape(-1)                     # (C,)
    nbias = -mean * inv_std                                                   # (C,)

    # Lane-dense pixel view; keep the native (e.g. uint8) dtype for the HBM read.
    x2d = x.reshape(N, HW_in)
    in_itemsize = x2d.dtype.itemsize

    if planes_per_step is None:
        planes_per_step = _choose_planes_per_step(
            N, HW_in, HW_out, in_itemsize, vmem_budget_bytes)
    NP = int(max(1, min(planes_per_step, N)))
    grid = (pl.cdiv(N, NP),)

    flops = 2 * N * HW_in * HW_out
    bytes_accessed = (N * HW_in * in_itemsize     # pixel read (narrow dtype)
                      + N * HW_out * 4            # output write
                      + HW_in * HW_out * 4        # fused resize matrix
                      + 2 * C * 4)                # SMEM scalars
    cost = pl.CostEstimate(flops=flops, transcendentals=0,
                           bytes_accessed=bytes_accessed)

    grid_spec = pltpu.PrefetchScalarGridSpec(
        num_scalar_prefetch=2,                    # inv_std, nbias -> SMEM
        grid=grid,
        in_specs=[
            pl.BlockSpec((NP, HW_in), lambda i, *_: (i, 0)),     # pixels (lane-dense)
            pl.BlockSpec((HW_in, HW_out), lambda i, *_: (0, 0)), # fused K (fetched once)
        ],
        out_specs=pl.BlockSpec((NP, HW_out), lambda i, *_: (i, 0)),  # lane-dense out
    )

    out = pl.pallas_call(
        _rgb_preprocess_kernel,
        out_shape=jax.ShapeDtypeStruct((N, HW_out), jnp.float32),
        grid_spec=grid_spec,
        compiler_params=pltpu.CompilerParams(
            dimension_semantics=("parallel",),
            vmem_limit_bytes=int(vmem_limit_bytes)),
        cost_estimate=cost,
    )(inv_std, nbias, x2d, k_mat)

    return out.reshape(B, C, H_out, W_out)


# ----------------------------------------------------------------------------
# Demo / correctness check
# ----------------------------------------------------------------------------
if __name__ == "__main__":
    B, C, H_in, W_in = 32, 3, 20, 20          # N = 96 planes -> multi-step grid
    rgb_shape = (16, 16)                      # (H_out, W_out)
    rgb_mean = np.array([0.485, 0.456, 0.406], np.float32)
    rgb_std = np.array([0.229, 0.224, 0.225], np.float32)

    key = jax.random.PRNGKey(0)
    # raw uint8 pixels — stay uint8 all the way into the kernel.
    x_u8 = jax.random.randint(key, (B, C, H_in, W_in), 0, 256,
                              dtype=jnp.int32).astype(jnp.uint8)

    w_h = bicubic_aa_weight_matrix(H_in, rgb_shape[0])     # (H_out, H_in)
    w_w = bicubic_aa_weight_matrix(W_in, rgb_shape[1])     # (W_out, W_in)

    out = rgb_preprocess(x_u8, w_h, w_w, rgb_mean, rgb_std)
    out = jax.block_until_ready(out)

    # pure-JAX reference of the same math (separable formulation).
    xs = x_u8.astype(jnp.float32) / 255.0
    tmp = jnp.einsum("op,bcpq->bcoq", jnp.asarray(w_h), xs)
    res = jnp.einsum("bcoq,wq->bcow", tmp, jnp.asarray(w_w))
    ref = (res - rgb_mean[None, :, None, None]) / (rgb_std[None, :, None, None] + 1e-6)

    np.testing.assert_allclose(np.asarray(out), np.asarray(ref),
                               rtol=2e-4, atol=2e-4)
    print("KERNEL_OK")
</pallas_src>

<mosaic_0001>
module attributes {stable_mosaic.version = 11 : i64} {
  func.func @_rgb_preprocess_kernel(%arg0: i32, %arg1: memref<3xf32, #tpu.memory_space<smem>>, %arg2: memref<3xf32, #tpu.memory_space<smem>>, %arg3: memref<32x400xi8, #tpu.memory_space<vmem>>, %arg4: memref<400x256xf32, #tpu.memory_space<vmem>>, %arg5: memref<32x256xf32, #tpu.memory_space<vmem>>) attributes {dimension_semantics = [#tpu.dimension_semantics<parallel>], iteration_bounds = array<i64: 3>, scalar_prefetch = 2 : i64, scratch_operands = 0 : i64, tpu.core_type = #tpu.core_type<tc>, window_params = [{transform_indices = @transform_0, window_bounds = array<i64: 32, 400>}, {pipeline_mode = #tpu.pipeline_mode<synchronous>, transform_indices = @transform_1, window_bounds = array<i64: 400, 256>}, {transform_indices = @transform_2, window_bounds = array<i64: 32, 256>}]} {
    %c0 = arith.constant 0 : index
    %c0_0 = arith.constant 0 : index
    %0 = vector.load %arg3[%c0, %c0_0] : memref<32x400xi8, #tpu.memory_space<vmem>>, vector<32x400xi8>
    %1 = arith.uitofp %0 : vector<32x400xi8> to vector<32x400xf32>
    %c0_1 = arith.constant 0 : index
    %c0_2 = arith.constant 0 : index
    %2 = vector.load %arg4[%c0_1, %c0_2] : memref<400x256xf32, #tpu.memory_space<vmem>>, vector<400x256xf32>
    %cst = arith.constant dense<0.000000e+00> : vector<32x256xf32>
    %3 = tpu.matmul %1, %2, %cst {dimension_numbers = #tpu.dot_dimension_numbers<[1], [0], [0], [1], [0, 0, 1, 1], [], []>} : vector<32x400xf32>, vector<400x256xf32>, vector<32x256xf32> -> vector<32x256xf32>
    %c32_i32 = arith.constant 32 : i32
    %4 = arith.muli %arg0, %c32_i32 : i32
    %5 = tpu.iota {dimensions = array<i32: 0>} : vector<32x1xi32>
    %6 = vector.broadcast %4 : i32 to vector<32x1xi32>
    %7 = arith.addi %6, %5 : vector<32x1xi32>
    %c3_i32 = arith.constant 3 : i32
    %c0_i32 = arith.constant 0 : i32
    %8 = arith.cmpi eq, %c3_i32, %c0_i32 : i32
    %c1_i32 = arith.constant 1 : i32
    %9 = arith.select %8, %c1_i32, %c3_i32 : i32
    %10 = vector.broadcast %9 : i32 to vector<32x1xi32>
    %11 = arith.remsi %7, %10 : vector<32x1xi32>
    %c0_i32_3 = arith.constant 0 : i32
    %12 = vector.broadcast %c0_i32_3 : i32 to vector<32x1xi32>
    %13 = arith.cmpi ne, %11, %12 : vector<32x1xi32>
    %c0_i32_4 = arith.constant 0 : i32
    %14 = vector.broadcast %c0_i32_4 : i32 to vector<32x1xi32>
    %15 = arith.cmpi slt, %11, %14 : vector<32x1xi32>
    %c0_i32_5 = arith.constant 0 : i32
    %16 = arith.cmpi slt, %9, %c0_i32_5 : i32
    %17 = vector.broadcast %16 : i1 to vector<32x1xi1>
    %18 = vector.broadcast %17 : vector<32x1xi1> to vector<32x1xi1>
    %19 = arith.xori %15, %18 : vector<32x1xi1>
    %20 = arith.andi %19, %13 : vector<32x1xi1>
    %21 = vector.broadcast %9 : i32 to vector<32x1xi32>
    %22 = arith.addi %11, %21 : vector<32x1xi32>
    %23 = arith.select %20, %22, %11 : vector<32x1xi1>, vector<32x1xi32>
    %c0_6 = arith.constant 0 : index
    %24 = memref.load %arg1[%c0_6] : memref<3xf32, #tpu.memory_space<smem>>
    %25 = vector.broadcast %24 : f32 to vector<32x1xf32>
    %c0_7 = arith.constant 0 : index
    %26 = memref.load %arg2[%c0_7] : memref<3xf32, #tpu.memory_space<smem>>
    %27 = vector.broadcast %26 : f32 to vector<32x1xf32>
    %c1_i32_8 = arith.constant 1 : i32
    %28 = vector.broadcast %c1_i32_8 : i32 to vector<32x1xi32>
    %29 = arith.cmpi eq, %23, %28 : vector<32x1xi32>
    %c1 = arith.constant 1 : index
    %30 = memref.load %arg1[%c1] : memref<3xf32, #tpu.memory_space<smem>>
    %31 = vector.broadcast %30 : f32 to vector<32x1xf32>
    %32 = arith.select %29, %31, %25 : vector<32x1xi1>, vector<32x1xf32>
    %c1_i32_9 = arith.constant 1 : i32
    %33 = vector.broadcast %c1_i32_9 : i32 to vector<32x1xi32>
    %34 = arith.cmpi eq, %23, %33 : vector<32x1xi32>
    %c1_10 = arith.constant 1 : index
    %35 = memref.load %arg2[%c1_10] : memref<3xf32, #tpu.memory_space<smem>>
    %36 = vector.broadcast %35 : f32 to vector<32x1xf32>
    %37 = arith.select %34, %36, %27 : vector<32x1xi1>, vector<32x1xf32>
    %c2_i32 = arith.constant 2 : i32
    %38 = vector.broadcast %c2_i32 : i32 to vector<32x1xi32>
    %39 = arith.cmpi eq, %23, %38 : vector<32x1xi32>
    %c2 = arith.constant 2 : index
    %40 = memref.load %arg1[%c2] : memref<3xf32, #tpu.memory_space<smem>>
    %41 = vector.broadcast %40 : f32 to vector<32x1xf32>
    %42 = arith.select %39, %41, %32 : vector<32x1xi1>, vector<32x1xf32>
    %c2_i32_11 = arith.constant 2 : i32
    %43 = vector.broadcast %c2_i32_11 : i32 to vector<32x1xi32>
    %44 = arith.cmpi eq, %23, %43 : vector<32x1xi32>
    %c2_12 = arith.constant 2 : index
    %45 = memref.load %arg2[%c2_12] : memref<3xf32, #tpu.memory_space<smem>>
    %46 = vector.broadcast %45 : f32 to vector<32x1xf32>
    %47 = arith.select %44, %46, %37 : vector<32x1xi1>, vector<32x1xf32>
    %48 = vector.broadcast %42 : vector<32x1xf32> to vector<32x256xf32>
    %49 = arith.mulf %3, %48 : vector<32x256xf32>
    %50 = vector.broadcast %47 : vector<32x1xf32> to vector<32x256xf32>
    %51 = arith.addf %49, %50 : vector<32x256xf32>
    %c0_13 = arith.constant 0 : index
    %c0_14 = arith.constant 0 : index
    %52 = vector.load %arg5[%c0_13, %c0_14] : memref<32x256xf32, #tpu.memory_space<vmem>>, vector<32x256xf32>
    tpu.vector_store %arg5[%c0_13, %c0_14], %51 {strides = array<i32>} : memref<32x256xf32, #tpu.memory_space<vmem>>, vector<32x256xf32>,
    return
  }
  func.func @transform_0(%arg0: i32, %arg1: memref<3xf32, #tpu.memory_space<smem>>, %arg2: memref<3xf32, #tpu.memory_space<smem>>) -> (i32, i32) {
    %c0_i32 = arith.constant 0 : i32
    %c0_i32_0 = arith.constant 0 : i32
    return %arg0, %c0_i32 : i32, i32
  }
  func.func @transform_1(%arg0: i32, %arg1: memref<3xf32, #tpu.memory_space<smem>>, %arg2: memref<3xf32, #tpu.memory_space<smem>>) -> (i32, i32) {
    %c0_i32 = arith.constant 0 : i32
    %c0_i32_0 = arith.constant 0 : i32
    %c0_i32_1 = arith.constant 0 : i32
    return %c0_i32, %c0_i32_0 : i32, i32
  }
  func.func @transform_2(%arg0: i32, %arg1: memref<3xf32, #tpu.memory_space<smem>>, %arg2: memref<3xf32, #tpu.memory_space<smem>>) -> (i32, i32) {
    %c0_i32 = arith.constant 0 : i32
    %c0_i32_0 = arith.constant 0 : i32
    return %arg0, %c0_i32 : i32, i32
  }
}

</mosaic_0001>

<bundles_post_ra>
// kernel: tpu_custom_call.1
= control target key start
LH: loop header
LB: loop body
LE: loop exit
PB: predicated region body
PF: predicated region fallthrough
CT: control target
= control target key end

     0   :  { %s1457_s0 = inlined_call_operand.hbm [shape: f32[3], index: 0, kind: input, shape index: {}]   ;;  %s1458_s2 = inlined_call_operand.hbm [shape: u8[96,400], index: 2, kind: input, shape index: {}]   ;;  %s1459_s3 = inlined_call_operand.hbm [shape: f32[400,256], index: 3, kind: input, shape index: {}]   ;;  %s1460_s4 = inlined_call_operand.hbm [shape: f32[96,256], index: 4, kind: output, shape index: {}]   ;;  %s1461_s1 = inlined_call_operand.vmem [shape: f32[3], index: 1, kind: input, shape index: {}]  }
   0x1   :  { %s974_s17 = scalar_lea.hbm %s1457_s0, 16 }
   0x2   :  { %p975_p0 = scmp.ne.s32.totalorder %s1457_s0, %s974_s17  ;;  %p978_p1 = scmp.lt.u32.totalorder %s974_s17, %s1457_s0 }
   0x4   :  { %p980_p2 = pnand %p978_p1, %p975_p0 }
   0x6   :  { %983 = shalt.err (!%p980_p2)  }
   0x7   :  { %s1128_s22 = smov [#allocation3]   ;;  %s11_s27 = sshll.u32 %s1461_s1, 4  ;;  %s12_s27 = int_to_ptr.vmem [resolvable:$true] %s11_s27 }
   0x8   :  { %10 = dma.hbm_to_smem %s1457_s0, 16, %s1128_s22, [#allocation2] }
   0x9   :  { %s984_s28 = scalar_lea.vmem %s12_s27, 16  ;;  %p989_p4 = scmp.lt.s32.totalorder %s12_s27, %s12_s27 }
   0xa   :  { %p985_p3 = scmp.ne.s32.totalorder %s12_s27, %s984_s28  ;;  %p990_p5 = scmp.lt.s32.totalorder %s984_s28, %s984_s28 }
   0xc   :  { %p991_p6 = por %p990_p5, %p989_p4 }
   0xe   :  { %p992_p7 = pnand %p991_p6, %p985_p3 }
  0x10   :  { %995 = shalt.err (!%p992_p7)  }
  0x11   :  { %s1129_s29 = smov [#allocation4]  }
  0x12   :  { %14 = dma.vmem_to_smem %s12_s27, 16, %s1129_s29, [#allocation2] }
  0x13   :  { %1098 = dma.done.wait [#allocation2], 32 }
  0x14   :  { %1099 = vsyncadd [#allocation2], 4294967264 }
  0x15   :  { %16 = sfence }
  0x16   :  { %17 = vsyncpa [#allocation6], 0 }
  0x17   :  { %19 = vsyncpa [#allocation6 + $0x1], 0 }
  0x18   :  { %20 = vsyncpa [#allocation9], 0 }
  0x19   :  { %21 = vsyncpa [#allocation7], 0 }
  0x1a   :  { %23 = vsyncpa [#allocation7 + $0x1], 0  ;;  %s1177_s0 = smov 0   ;;  %s1179_s1 = smov 0  }
  0x1b   :  { %s1181_s30 = smov 0   ;;  %s1183_s5 = smov 0  }
  0x1c LB: > { %s1198_s6 = sadd.s32 4294967295, %s1126_s5   ;;  %s762_s7 = sadd.s32 4294967294, %s1126_s5   ;;  %s1126_s5 = sphi %s1183_s5, %s1480_s5   ;;  %s1122_s30 = sphi %s1181_s30, %s1479_s30   ;;  %s1118_s1 = sphi %s1179_s1, %s1478_s1   ;;  %s1114_s0 = sphi %s1177_s0, %s1477_s0  }
  0x1d   : > { %p49_p8 = scmp.ne.s32.totalorder %s1118_s1, %s1114_s0  ;;  %p1462_p9 = scmp.eq.s32.totalorder %s1198_s6, 0 }
  0x1e   : > { %p100_p11 = scmp.eq.s32.totalorder %s762_s7, 2  ;;  %p763_p13 = scmp.ge.s32.totalorder %s1126_s5, 1 }
  0x1f   : > { %p1207_p12 = por %p1462_p9, %p49_p8  ;;  %p107_p1 = scmp.lt.s32.totalorder %s1126_s5, 4 }
  0x20   : > { %p1212_p0 = por %p100_p11, %p49_p8  ;;  %s1130_s11 = smov [#allocation8]  }
  0x21   : > { %s1465_s8 = scalar_select %p1207_p12, 1, 0 }
  0x22   : > { %s1466_s9 = scalar_select %p1212_p0, 1, 0 }
  0x23   : > { %p1217_p2 = pnand %p763_p13, %p107_p1  ;;  %s119_s12 = sshll.u32 %s1130_s11, 4  ;;  %s120_s12 = int_to_ptr.vmem [resolvable:$true] %s119_s12 }
  0x24   : > { %s1230_s14 = sadd.s32 1, %s1126_s5   ;;  %s36_s15 = sadd.s32 1, %s1122_s30 }
  0x25   : > { %s1467_s10 = scalar_select %p1217_p2, 1, 0 }
  0x26   : > { %p919_p3 = pneg %p1217_p2  ;;  %s33_s16 = ssub.s32 %s1126_s5, %s1230_s14 }
  0x27   : > { %s996_s19 = scalar_lea.hbm %s1459_s3, 12800 }
  0x28   : > { %p1225_p4 = pnand %p919_p3, %p1462_p9  ;;  %p997_p5 = scmp.ne.s32.totalorder %s1459_s3, %s996_s19 }
  0x29   : > { %p1003_p11 = scmp.lt.u32.totalorder %s996_s19, %s1459_s3 }
  0x2a   : > { %p998_p6 = pneg %p1225_p4 }
  0x2c   : > { %p999_p7 = pnand %p998_p6, %p997_p5 }
  0x2e   : > { %p1000_p8 = pneg %p999_p7 }
  0x30   : > { %p1005_p13 = pnand %p1003_p11, %p1000_p8 }
  0x32   : > { %1008 = shalt.err (!%p1005_p13)
}
  0x33   : > { %s1009_s24 = scalar_lea.vmem %s120_s12, 12800  ;;  %p1017_p10 = scmp.lt.s32.totalorder %s120_s12, %s120_s12 }
  0x34   : > { %p1010_p1 = scmp.ne.s32.totalorder %s120_s12, %s1009_s24  ;;  %p1018_p0 = scmp.lt.s32.totalorder %s1009_s24, %s1009_s24 }
  0x36   : > { %p1012_p3 = pnand %p1010_p1, %p998_p6  ;;  %p1019_p12 = por %p1018_p0, %p1017_p10 }
  0x38   : > { %p1013_p9 = pneg %p1012_p3 }
  0x3a   : > { %p1020_p2 = pnand %p1019_p12, %p1013_p9 }
  0x3c   : > { %1023 = shalt.err (!%p1020_p2)
}
  0x3d   : > { %s1131_s25 = smov 256   ;;  %s1132_s26 = smov 16  }
  0x3e   : > { %922 = dma.hbm_to_vmem [thread:$0]  (!%p1225_p4), %s1459_s3, 12800, %s120_s12, [#allocation9], %s1131_s25, %s1131_s25, %s1132_s26  }
  0x3f   : > { %p34_p5 = scmp.eq.s32.totalorder %s33_s16, 0  ;;  %p43_p10 = scmp.ne.s32.totalorder %s1122_s30, %s1118_s1 }
  0x40   : > { %p44_p9 = scmp.eq.s32.totalorder %s1126_s5, 0  ;;  %p932_p12 = scmp.lt.s32.totalorder %s1126_s5, 3 }
  0x41   : > { %s1256_s29 = scalar_select %p34_p5, %s1122_s30, %s36_s15  }
  0x42   : > { %p45_p0 = por %p44_p9, %p43_p10  ;;  %p1469_p2 = scmp.eq.s32.totalorder %s1198_s6, 2 }
  0x43   : > { %s133_s11 = sand.u32 1, %s1122_s30   ;;  %s792_s17 = sshll.u32 %s1126_s5, 9 }
  0x44   : > { %p1260_p6 = por %p1469_p2, %p43_p10  ;;  %s766_s18 = sshll.u32 %s133_s11, 5 }
  0x45   : > { %s1269_s20 = scalar_lea.hbm %s1458_s2, %s792_s17  ;;  %s137_s12 = scalar_lea.vmem [#allocation5], %s766_s18 }
  0x46   : > { %s145_s15 = sshll.u32 %s137_s12, 4  ;;  %p1271_p4 = pnand %p932_p12, %p45_p0  ;;  %s1275_s15 = int_to_ptr.vmem [resolvable:$true] %s145_s15 }
  0x47   : > { %s134_s21 = scalar_lea.sflag [#allocation6], %s133_s11  ;;  %s1024_s22 = scalar_lea.hbm %s1269_s20, 512 }
  0x48   : > { %p1025_p7 = scmp.ne.s32.totalorder %s1269_s20, %s1024_s22  ;;  %p1026_p8 = pneg %p1271_p4 }
  0x49   : > { %s1029_s25 = scalar_lea.hbm %s1458_s2, 1536  ;;  %p1030_p1 = scmp.lt.u32.totalorder %s1269_s20, %s1458_s2 }
  0x4a   : > { %p1027_p11 = pnand %p1026_p8, %p1025_p7  ;;  %p1031_p3 = scmp.lt.u32.totalorder %s1029_s25, %s1024_s22 }
  0x4b   : > { %p1033_p10 = scmp.lt.u32.totalorder %s1024_s22, %s1269_s20 }
  0x4c   : > { %p1028_p13 = pneg %p1027_p11  ;;  %p1032_p5 = por %p1031_p3, %p1030_p1 }
  0x4e   : > { %p1034_p9 = por %p1033_p10, %p1032_p5 }
  0x50   : > { %p1035_p12 = pnand %p1034_p9, %p1028_p13 }
  0x52   : > { %1038 = shalt.err (!%p1035_p12)
}
  0x53   : > { %s1039_s28 = scalar_lea.vmem %s1275_s15, 512  ;;  %s1133_s11 = smov [#allocation5]  }
  0x54   : > { %p1040_p0 = scmp.ne.s32.totalorder %s1275_s15, %s1039_s28  ;;  %s1044_s17 = sshll.u32 %s1133_s11, 4  ;;  %s1045_s17 = int_to_ptr.vmem [resolvable:$false] %s1044_s17 }
  0x55   : > { %s1046_s18 = scalar_lea.vmem %s1045_s17, 1024  ;;  %p1047_p11 = scmp.lt.s32.totalorder %s1275_s15, %s1045_s17 }
  0x56   : > { %p1042_p2 = pnand %p1040_p0, %p1026_p8  ;;  %p1048_p1 = scmp.lt.s32.totalorder %s1046_s18, %s1039_s28 }
  0x58   : > { %p1043_p7 = pneg %p1042_p2  ;;  %p1049_p3 = por %p1048_p1, %p1047_p11 }
  0x5a   : > { %p1050_p5 = pnand %p1049_p3, %p1043_p7 }
  0x5c   : > { %1053 = shalt.err (!%p1050_p5)
}
  0x5d   : > { %926 = dma.hbm_to_vmem [thread:$0]  (!%p1271_p4), %s1269_s20, 512, %s1275_s15, %s134_s21  }
  0x5e   : > { %p1472_p13 = scmp.ne.s32.totalorder %s1467_s10, 0 }
  0x5f   : > { %s1305_s13 = sand.u32 (!%p1472_p13), 1, %s1118_s1   ;;  %p1473_p8 = scmp.ne.s32.totalorder (!%p1472_p13), %s1465_s8, 0 }
  0x60   : > { %154 = sbr.rel (%p1472_p13) target bundleno = 420 (0x1a4), region = 28  ;;  %s770_s19 = sshll.u32 (!%p1472_p13), %s1305_s13, 5 }
  0x61   : > { %s157_s12 = scalar_lea.sflag (!%p1472_p13), [#allocation6], %s1305_s13  ;;  %s1309_s22 = scalar_lea.vmem (!%p1472_p13), [#allocation5], %s770_s19 }
  0x67   : > { %1101 = dma.done.wait (%p1473_p8), %s157_s12, 512  }
  0x68   : > { %1103 = vsyncadd (%p1473_p8), %s157_s12, 4294966784  ;;  %p1474_p4 = scmp.eq.s32.totalorder %s1198_s6, 0 }
  0x6a   : > { %1105 = dma.done.wait (%p1474_p4), [#allocation9], 12800   ;;  %p1475_p10 = pmov %p1474_p4 }
  0x6b   : > { %v239_v0 = vld [vmem:[#allocation8 + $0x8] sm:$0xff]  ;;  %v241_v1 = vld [vmem:[#allocation8 + $0x18] sm:$0xff]  ;;  %v238_v2 = vld [vmem:[#allocation8] sm:$0xff]  ;;  %vm338_vm0 = vcmask 130048   ;;  %s777_s8 = sshll.u32 %s1198_s6, 5  ;;  %s604_s10 = sld [smem:[#allocation3]] }
  0x6c   : > { %1107 = vsyncadd (%p1475_p10), [#allocation9], 4294954496  ;;  %v795_v3 = vpack.c.bf16 %v241_v1, %v239_v0  ;;  %v240_v4 = vld [vmem:[#allocation8 + $0x10] sm:$0xff]  ;;  %v243_v5 = vld [vmem:[#allocation8 + $0x28] sm:$0xff]  ;;  %s782_s20 = sld [smem:[#allocation3 + $0x1]]  ;;  %s606_s15 = sld [smem:[#allocation4]] }
  0x6d   : > { %v245_v6 = vld [vmem:[#allocation8 + $0x38] sm:$0xff]  ;;  %v797_v7 = vpack.c.bf16 %v240_v4, %v238_v2  ;;  %v242_v9 = vld [vmem:[#allocation8 + $0x20] sm:$0xff]  ;;  %v244_v10 = vld [vmem:[#allocation8 + $0x30] sm:$0xff]  ;;  %s783_s16 = sld [smem:[#allocation4 + $0x1]]  ;;  %s784_s21 = sld [smem:[#allocation3 + $0x2]] }
  0x6e   : > { %v799_v8 = vpack.c.bf16 %v245_v6, %v243_v5  ;;  %v247_v11 = vld [vmem:[#allocation8 + $0x48] sm:$0xff]  ;;  %796 = vmatprep.subr.bf16.mxu1 %v795_v3  ;;  %v249_v12 = vld [vmem:[#allocation8 + $0x58] sm:$0xff]  ;;  %v801_v13 = vpack.c.bf16 %v244_v10, %v242_v9  ;;  %v246_v15 = vld [vmem:[#allocation8 + $0x40] sm:$0xff]  ;;  %s785_s23 = sld [smem:[#allocation4 + $0x2]]  ;;  %s772_s24 = sshll.u32 %s1305_s13, 6 }
  0x6f   : > { %798 = vmatpush1.bf16.msra.mxu1 %v797_v7  ;;  %v803_v14 = vpack.c.bf16 %v249_v12, %v247_v11  ;;  %v248_v16 = vld [vmem:[#allocation8 + $0x50] sm:$0xff]  ;;  %v251_v17 = vld [vmem:[#allocation8 + $0x68] sm:$0xff]  ;;  %v253_v18 = vld [vmem:[#allocation8 + $0x78] sm:$0xff]  ;;  %s1388_s25 = scalar_lea.vmem [#allocation10], %s772_s24  ;;  %s794_s26 = sshll.u32 %s1198_s6, 10 }
  0x70   : > { %800 = vmatprep.subr.bf16.mxu1 %v799_v8  ;;  %v805_v19 = vpack.c.bf16 %v248_v16, %v246_v15  ;;  %v250_v20 = vld [vmem:[#allocation8 + $0x60] sm:$0xff]  ;;  %v807_v21 = vpack.c.bf16 %v253_v18, %v251_v17  ;;  %v252_v22 = vld [vmem:[#allocation8 + $0x70] sm:$0xff]  ;;  %v303_v23 = vld [vmem:[#allocation8 + $0x208] sm:$0xff]  ;;  %s679_s27 = sshll.u32 %s1388_s25, 4  ;;  %s1410_s17 = scalar_lea.hbm %s1460_s4, %s794_s26  ;;  %s1412_s27 = int_to_ptr.vmem [resolvable:$true] %s679_s27 }
  0x71   : > { %v305_v24 = vld [vmem:[#allocation8 + $0x218] sm:$0xff]  ;;  %v255_v25 = vld [vmem:[#allocation8 + $0x88] sm:$0xff]  ;;  %v302_v28 = vld [vmem:[#allocation8 + $0x200] sm:$0xff]  ;;  %v809_v30 = vpack.c.bf16 %v252_v22, %v250_v20  ;;  %s665_s6 = scalar_lea.sflag [#allocation7], %s1305_s13  ;;  %s1054_s18 = scalar_lea.vmem %s1412_s27, 1024 }
  0x72   : > { %v257_v26 = vld [vmem:[#allocation8 + $0x98] sm:$0xff]  ;;  %v859_v27 = vpack.c.bf16 %v305_v24, %v303_v23  ;;  %v304_v29 = vld [vmem:[#allocation8 + $0x210] sm:$0xff]  ;;  %v254_v31 = vld [vmem:[#allocation8 + $0x80] sm:$0xff]  ;;  %p1055_p9 = scmp.ne.s32.totalorder %s1412_s27, %s1054_s18  ;;  %s1134_s19 = smov [#allocation10]  }
  0x73   : > { %802 = vmatpush1.bf16.msra.mxu1 %v801_v13  ;;  %v861_v32 = vpack.c.bf16 %v304_v29, %v302_v28  ;;  %v307_v33 = vld [vmem:[#allocation8 + $0x228] sm:$0xff]  ;;  %v309_v34 = vld [vmem:[#allocation8 + $0x238] sm:$0xff]  ;;  %v811_v35 = vpack.c.bf16 %v257_v26, %v255_v25  ;;  %v256_v36 = vld [vmem:[#allocation8 + $0x90] sm:$0xff]  ;;  %s1058_s12 = sshll.u32 %s1134_s19, 4  ;;  %s1059_s12 = int_to_ptr.vmem [resolvable:$false] %s1058_s12 }
  0x74   : > { %804 = vmatprep.subr.bf16.mxu1 %v803_v14  ;;  %860 = vmatprep.subr.bf16.mxu0 %v859_v27  ;;  %v863_v37 = vpack.c.bf16 %v309_v34, %v307_v33  ;;  %v306_v38 = vld [vmem:[#allocation8 + $0x220] sm:$0xff]  ;;  %v308_v39 = vld [vmem:[#allocation8 + $0x230] sm:$0xff]  ;;  %v259_v40 = vld [vmem:[#allocation8 + $0xa8] sm:$0xff]  ;;  %v813_v45 = vpack.c.bf16 %v256_v36, %v254_v31  ;;  %p1056_p12 = pnand %p1055_p9, %p1260_p6  ;;  %p1061_p2 = scmp.lt.s32.totalorder %s1412_s27, %s1059_s12 }
  0x75   : > { %v261_v41 = vld [vmem:[#allocation8 + $0xb8] sm:$0xff]  ;;  %862 = vmatpush1.bf16.msra.mxu0 %v861_v32  ;;  %v865_v42 = vpack.c.bf16 %v308_v39, %v306_v38  ;;  %v311_v43 = vld [vmem:[#allocation8 + $0x248] sm:$0xff]  ;;  %v258_v46 = vld [vmem:[#allocation8 + $0xa0] sm:$0xff] }
  0x76   : > { %864 = vmatprep.subr.bf16.mxu0 %v863_v37  ;;  %v313_v44 = vld [vmem:[#allocation8 + $0x258] sm:$0xff]  ;;  %v310_v48 = vld [vmem:[#allocation8 + $0x240] sm:$0xff]  ;;  %v312_v49 = vld [vmem:[#allocation8 + $0x250] sm:$0xff]  ;;  %v815_v50 = vpack.c.bf16 %v261_v41, %v259_v40  ;;  %p1057_p0 = pneg %p1056_p12 }
  0x77   : > { %806 = vmatpush1.bf16.msra.mxu1 %v805_v19  ;;  %v867_v47 = vpack.c.bf16 %v313_v44, %v311_v43  ;;  %v260_v51 = vld [vmem:[#allocation8 + $0xb0] sm:$0xff]  ;;  %v315_v52 = vld [vmem:[#allocation8 + $0x268] sm:$0xff]  ;;  %v317_v53 = vld [vmem:[#allocation8 + $0x278] sm:$0xff]  ;;  %v869_v56 = vpack.c.bf16 %v312_v49, %v310_v48 }
  0x78   : > { %808 = vmatprep.subr.bf16.mxu1 %v807_v21  ;;  %v263_v54 = vld [vmem:[#allocation8 + $0xc8] sm:$0xff]  ;;  %v265_v55 = vld [vmem:[#allocation8 + $0xd8] sm:$0xff]  ;;  %v871_v57 = vpack.c.bf16 %v317_v53, %v315_v52  ;;  %v314_v58 = vld [vmem:[#allocation8 + $0x260] sm:$0xff]  ;;  %v817_v60 = vpack.c.bf16 %v260_v51, %v258_v46 }
  0x79   : > { %866 = vmatpush1.bf16.msra.mxu0 %v865_v42  ;;  %v316_v59 = vld [vmem:[#allocation8 + $0x270] sm:$0xff]  ;;  %v319_v61 = vld [vmem:[#allocation8 + $0x288] sm:$0xff]  ;;  %v321_v62 = vld [vmem:[#allocation8 + $0x298] sm:$0xff]  ;;  %v819_v63 = vpack.c.bf16 %v265_v55, %v263_v54 }
  0x7a   : > { %868 = vmatprep.subr.bf16.mxu0 %v867_v47  ;;  %v262_v0 = vld [vmem:[#allocation8 + $0xc0] sm:$0xff]  ;;  %v264_v1 = vld [vmem:[#allocation8 + $0xd0] sm:$0xff]  ;;  %v267_v2 = vld [vmem:[#allocation8 + $0xe8] sm:$0xff]  ;;  %v873_v4 = vpack.c.bf16 %v316_v59, %v314_v58  ;;  %v875_v5 = vpack.c.bf16 %v321_v62, %v319_v61 }
  0x7b   : > { %810 = vmatpush1.bf16.msra.mxu1 %v809_v30  ;;  %v269_v3 = vld [vmem:[#allocation8 + $0xf8] sm:$0xff]  ;;  %v318_v6 = vld [vmem:[#allocation8 + $0x280] sm:$0xff]  ;;  %v320_v7 = vld [vmem:[#allocation8 + $0x290] sm:$0xff]  ;;  %v821_v8 = vpack.c.bf16 %v264_v1, %v262_v0 }
  0x7c   : > { %812 = vmatprep.subr.bf16.mxu1 %v811_v35  ;;  %v323_v9 = vld [vmem:[#allocation8 + $0x2a8] sm:$0xff]  ;;  %v325_v10 = vld [vmem:[#allocation8 + $0x2b8] sm:$0xff]  ;;  %v823_v11 = vpack.c.bf16 %v269_v3, %v267_v2  ;;  %v266_v12 = vld [vmem:[#allocation8 + $0xe0] sm:$0xff]  ;;  %v877_v16 = vpack.c.bf16 %v320_v7, %v318_v6 }
  0x7d   : > { %870 = vmatpush1.bf16.msra.mxu0 %v869_v56  ;;  %v268_v13 = vld [vmem:[#allocation8 + $0xf0] sm:$0xff]  ;;  %v271_v14 = vld [vmem:[#allocation8 + $0x108] sm:$0xff]  ;;  %v273_v15 = vld [vmem:[#allocation8 + $0x118] sm:$0xff]  ;;  %v879_v17 = vpack.c.bf16 %v325_v10, %v323_v9 }
  0x7e   : > { %872 = vmatprep.subr.bf16.mxu0 %v871_v57  ;;  %v322_v18 = vld [vmem:[#allocation8 + $0x2a0] sm:$0xff]  ;;  %v324_v19 = vld [vmem:[#allocation8 + $0x2b0] sm:$0xff]  ;;  %v825_v20 = vpack.c.bf16 %v268_v13, %v266_v12  ;;  %v327_v21 = vld [vmem:[#allocation8 + $0x2c8] sm:$0xff]  ;;  %v827_v23 = vpack.c.bf16 %v273_v15, %v271_v14 }
  0x7f   : > { %814 = vmatpush1.bf16.msra.mxu1 %v813_v45  ;;  %v329_v22 = vld [vmem:[#allocation8 + $0x2d8] sm:$0xff]  ;;  %v270_v24 = vld [vmem:[#allocation8 + $0x100] sm:$0xff]  ;;  %v272_v25 = vld [vmem:[#allocation8 + $0x110] sm:$0xff]  ;;  %v881_v28 = vpack.c.bf16 %v324_v19, %v322_v18 }
  0x80   : > { %816 = vmatprep.subr.bf16.mxu1 %v815_v50  ;;  %v275_v26 = vld [vmem:[#allocation8 + $0x128] sm:$0xff]  ;;  %v277_v27 = vld [vmem:[#allocation8 + $0x138] sm:$0xff]  ;;  %v883_v29 = vpack.c.bf16 %v329_v22, %v327_v21  ;;  %v326_v30 = vld [vmem:[#allocation8 + $0x2c0] sm:$0xff]  ;;  %v829_v32 = vpack.c.bf16 %v272_v25, %v270_v24 }
  0x81   : > { %874 = vmatpush1.bf16.msra.mxu0 %v873_v4  ;;  %v328_v31 = vld [vmem:[#allocation8 + $0x2d0] sm:$0xff]  ;;  %v274_v33 = vld [vmem:[#allocation8 + $0x120] sm:$0xff]  ;;  %v331_v34 = vld [vmem:[#allocation8 + $0x2e8] sm:$0xff]  ;;  %v831_v36 = vpack.c.bf16 %v277_v27, %v275_v26 }
  0x82   : > { %876 = vmatprep.subr.bf16.mxu0 %v875_v5  ;;  %v333_v35 = vld [vmem:[#allocation8 + $0x2f8] sm:$0xff]  ;;  %v276_v37 = vld [vmem:[#allocation8 + $0x130] sm:$0xff]  ;;  %v1323_v39 = vld [vmem:[%s1309_s22 + $0x8] sm:$0xff]  ;;  %v885_v42 = vpack.c.bf16 %v328_v31, %v326_v30 }
  0x83   : > { %818 = vmatpush1.bf16.msra.mxu1 %v817_v60  ;;  %v1320_v38 = vld [vmem:[%s1309_s22 + $0x18] sm:$0xff]  ;;  %v279_v40 = vld [vmem:[#allocation8 + $0x148] sm:$0xff]  ;;  %v191_v44 = vunpack.c.0.s8 %v1323_v39  ;;  %v1328_v45 = vld [vmem:[%s1309_s22 + $0x10] sm:$0xff]  ;;  %v887_v46 = vpack.c.bf16 %v333_v35, %v331_v34  ;;  %v833_v49 = vpack.c.bf16 %v276_v37, %v274_v33 }
  0x84   : > { %820 = vmatprep.subr.bf16.mxu1 %v819_v63  ;;  %v281_v41 = vld [vmem:[#allocation8 + $0x158] sm:$0xff]  ;;  %v193_v43 = vunpack.c.0.s8 %v1320_v38  ;;  %v330_v47 = vld [vmem:[#allocation8 + $0x2e0] sm:$0xff]  ;;  %v332_v48 = vld [vmem:[#allocation8 + $0x2f0] sm:$0xff]  ;;  %v192_v57 = vunpack.c.0.s8 %v1328_v45  ;;  %v197_v63 = vunpack.c.1.s8 %v1320_v38  ;;  %v201_v13 = vunpack.c.2.s8 %v1320_v38 }
  0x85   : > { %878 = vmatpush1.bf16.msra.mxu0 %v877_v16  ;;  %v335_v50 = vld [vmem:[#allocation8 + $0x308] sm:$0xff]  ;;  %v337_v51 = vld [vmem:[#allocation8 + $0x318] sm:$0xff]  ;;  %v207_v53 = vand.u32 255, %v191_v44  ;;  %v835_v54 = vpack.c.bf16 %v281_v41, %v279_v40  ;;  %v278_v55 = vld [vmem:[#allocation8 + $0x140] sm:$0xff]  ;;  %v889_v60 = vpack.c.bf16 %v332_v48, %v330_v47  ;;  %v205_v25 = vunpack.c.3.s8 %v1320_v38 }
  0x86   : > { %880 = vmatprep.subr.bf16.mxu0 %v879_v17  ;;  %v209_v52 = vand.u32 255, %v193_v43  ;;  %v280_v56 = vld [vmem:[#allocation8 + $0x150] sm:$0xff]  ;;  %v283_v58 = vld [vmem:[#allocation8 + $0x168] sm:$0xff]  ;;  %v285_v59 = vld [vmem:[#allocation8 + $0x178] sm:$0xff]  ;;  %v891_v0 = vpack.c.bf16 %v337_v51, %v335_v50  ;;  %v208_v7 = vand.u32 255, %v192_v57  ;;  %v213_v12 = vand.u32 255, %v197_v63 }
  0x87   : > { %822 = vmatpush1.bf16.msra.mxu1 %v821_v8  ;;  %v223_v62 = vcvt.s32.f32 %v207_v53  ;;  %v334_v1 = vld [vmem:[#allocation8 + $0x300] sm:$0xff]  ;;  %v336_v2 = vld [vmem:[#allocation8 + $0x310] sm:$0xff]  ;;  %v837_v3 = vpack.c.bf16 %v280_v56, %v278_v55  ;;  %v839_v4 = vpack.c.bf16 %v285_v59, %v283_v58  ;;  %v196_v8 = vunpack.c.1.s8 %v1328_v45  ;;  %v287_v9 = vld [vmem:[#allocation8 + $0x188] sm:$0xff] }
  0x88   : > { %824 = vmatprep.subr.bf16.mxu1 %v823_v11  ;;  %v225_v61 = vcvt.s32.f32 %v209_v52  ;;  %v282_v5 = vld [vmem:[#allocation8 + $0x160] sm:$0xff]  ;;  %v284_v6 = vld [vmem:[#allocation8 + $0x170] sm:$0xff]  ;;  %v289_v10 = vld [vmem:[#allocation8 + $0x198] sm:$0xff]  ;;  %v893_v11 = vpack.c.bf16 %v336_v2, %v334_v1  ;;  %v224_v18 = vcvt.s32.f32 %v208_v7  ;;  %v217_v24 = vand.u32 255, %v201_v13 }
  0x89   : > { %882 = vmatpush1.bf16.msra.mxu0 %v881_v28  ;;  %415 = vmatprep.mubr.f32.mxu1 %v223_v62  ;;  %v841_v14 = vpack.c.bf16 %v284_v6, %v282_v5  ;;  %v843_v15 = vpack.c.bf16 %v289_v10, %v287_v9  ;;  %v286_v16 = vld [vmem:[#allocation8 + $0x180] sm:$0xff]  ;;  %v288_v17 = vld [vmem:[#allocation8 + $0x190] sm:$0xff]  ;;  %v212_v19 = vand.u32 255, %v196_v8  ;;  %v291_v21 = vld [vmem:[#allocation8 + $0x1a8] sm:$0xff]  ;;  %v195_v50 = vunpack.c.1.s8 %v1323_v39 }
  0x8a   : > { %884 = vmatprep.subr.bf16.mxu0 %v883_v29  ;;  %773 = vmatprep.mubr.msk.f32.mxu0 %vm338_vm0, %v225_v61  ;;  %v293_v22 = vld [vmem:[#allocation8 + $0x1b8] sm:$0xff]  ;;  %v845_v26 = vpack.c.bf16 %v288_v17, %v286_v16  ;;  %v290_v28 = vld [vmem:[#allocation8 + $0x1a0] sm:$0xff]  ;;  %v292_v29 = vld [vmem:[#allocation8 + $0x1b0] sm:$0xff]  ;;  %v233_v35 = vcvt.s32.f32 %v217_v24  ;;  %v199_v59 = vunpack.c.2.s8 %v1323_v39  ;;  %v203_v1 = vunpack.c.3.s8 %v1323_v39 }
  0x8b   : > { %826 = vmatpush1.bf16.msra.mxu1 %v825_v20  ;;  %v200_v20 = vunpack.c.2.s8 %v1328_v45  ;;  %v847_v27 = vpack.c.bf16 %v293_v22, %v291_v21  ;;  %v228_v30 = vcvt.s32.f32 %v212_v19  ;;  %v295_v33 = vld [vmem:[#allocation8 + $0x1c8] sm:$0xff]  ;;  %v297_v34 = vld [vmem:[#allocation8 + $0x1d8] sm:$0xff]  ;;  %v849_v37 = vpack.c.bf16 %v292_v29, %v290_v28  ;;  %v186_v38 = vld [vmem:[%s1309_s22] sm:$0xff]  ;;  %s1060_s22 = scalar_lea.vmem %s1059_s12, 2048 }
  0x8c   : > { %828 = vmatprep.subr.bf16.mxu1 %v827_v23  ;;  %v229_v23 = vcvt.s32.f32 %v213_v12  ;;  %v851_v40 = vpack.c.bf16 %v297_v34, %v295_v33  ;;  %v294_v41 = vld [vmem:[#allocation8 + $0x1c0] sm:$0xff]  ;;  %v301_v47 = vld [vmem:[#allocation8 + $0x1f8] sm:$0xff]  ;;  %v190_v48 = vunpack.c.0.s8 %v186_v38  ;;  %v300_v53 = vld [vmem:[#allocation8 + $0x1f0] sm:$0xff]  ;;  %v194_v56 = vunpack.c.1.s8 %v186_v38  ;;  %p1062_p7 = scmp.lt.s32.totalorder %s1060_s22, %s1054_s18 }
  0x8d   : > { %886 = vmatpush1.bf16.msra.mxu0 %v885_v42  ;;  %v216_v31 = vand.u32 255, %v200_v20  ;;  %v296_v42 = vld [vmem:[#allocation8 + $0x1d0] sm:$0xff]  ;;  %v298_v52 = vld [vmem:[#allocation8 + $0x1e0] sm:$0xff]  ;;  %v211_v58 = vand.u32 255, %v195_v50  ;;  %v198_v62 = vunpack.c.2.s8 %v186_v38  ;;  %v219_v6 = vand.u32 255, %v203_v1 }
  0x8e   : > { %888 = vmatprep.subr.bf16.mxu0 %v887_v46  ;;  %v299_v46 = vld [vmem:[#allocation8 + $0x1e8] sm:$0xff]  ;;  %v206_v55 = vand.u32 255, %v190_v48  ;;  %v857_v57 = vpack.c.bf16 %v300_v53, %v298_v52  ;;  %v210_v61 = vand.u32 255, %v194_v56  ;;  %v535_v12 = vstv %s777_s8  ;;  %p1063_p11 = por %p1062_p7, %p1061_p2 }
  0x8f   : > { %830 = vmatpush1.bf16.msra.mxu1 %v829_v32  ;;  %v204_v32 = vunpack.c.3.s8 %v1328_v45  ;;  %v232_v43 = vcvt.s32.f32 %v216_v31  ;;  %v855_v51 = vpack.c.bf16 %v301_v47, %v299_v46  ;;  %v227_v63 = vcvt.s32.f32 %v211_v58 }
  0x90   : > { %832 = vmatprep.subr.bf16.mxu1 %v831_v36  ;;  %v221_v36 = vand.u32 255, %v205_v25  ;;  %v226_v2 = vcvt.s32.f32 %v210_v61  ;;  %v235_v9 = vcvt.s32.f32 %v219_v6  ;;  %v605_v1 = vstv %s604_s10  ;;  %p1064_p1 = pnand %p1063_p11, %p1057_p0 }
  0x91   : > { %890 = vmatpush1.bf16.msra.mxu0 %v889_v60  ;;  %v220_v44 = vand.u32 255, %v204_v32  ;;  %v222_v60 = vcvt.s32.f32 %v206_v55 }
  0x92   : > { %892 = vmatprep.subr.bf16.mxu0 %v891_v0  ;;  %v237_v45 = vcvt.s32.f32 %v221_v36  ;;  %v215_v0 = vand.u32 255, %v199_v59 }
  0x93   : > { %834 = vmatpush1.bf16.msra.mxu1 %v833_v49  ;;  %v853_v49 = vpack.c.bf16 %v296_v42, %v294_v41 }
  0x94   : > { %836 = vmatprep.subr.bf16.mxu1 %v835_v54  ;;  %v236_v54 = vcvt.s32.f32 %v220_v44  ;;  %v231_v5 = vcvt.s32.f32 %v215_v0 }
  0x95   : > { %894 = vmatpush1.bf16.msra.mxu0 %v893_v11  ;;  %v530_v11 = vlaneseq }
  0x97   : > { %838 = vmatpush1.bf16.msra.mxu1 %v837_v3  ;;  %v214_v3 = vand.u32 255, %v198_v62  ;;  %v531_v39 = vshrl.u32 %v530_v11, 7  ;;  %v629_v11 = vstv %s784_s21 }
  0x98   : > { %840 = vmatprep.subr.bf16.mxu1 %v839_v4  ;;  %505 = vmatmul.mubr.f32.vlgmr.msra.gmra.mrb[0].mxu0 %v224_v18  ;;  %v202_v4 = vunpack.c.3.s8 %v186_v38 }
  0x99   : > { %774 = vmatprep.mubr.msk.f32.mxu0 %vm338_vm0, %v229_v23  ;;  %v230_v7 = vcvt.s32.f32 %v214_v3  ;;  %v536_v13 = vadd.s32 %v535_v12, %v531_v39  ;;  %v533_v17 = vadd.s32 16, %v531_v39  ;;  %v534_v21 = vadd.s32 24, %v531_v39 }
  0x9a   : > { %v218_v8 = vand.u32 255, %v202_v4 }
  0x9b   : > { %842 = vmatpush1.bf16.msra.mxu1 %v841_v14  ;;  %v532_v14 = vadd.s32 8, %v531_v39  ;;  %v538_v20 = vadd.s32 %v535_v12, %v533_v17  ;;  %vm540_vm1 = vcmp.lt.s32.totalorder %v536_v13, 0 }
  0x9c   : > { %844 = vmatprep.subr.bf16.mxu1 %v843_v15  ;;  %511 = vmatmul.mubr.f32.gmra.mrb[2].mxu0 %v228_v30  ;;  %v234_v10 = vcvt.s32.f32 %v218_v8  ;;  %v541_v15 = vsub.s32 0, %v536_v13  ;;  %v607_v8 = vstv %s606_s15 }
  0x9d   : > { %775 = vmatprep.mubr.msk.f32.mxu0 %vm338_vm0, %v233_v35  ;;  %v537_v16 = vadd.s32 %v535_v12, %v532_v14  ;;  %v563_v25 = vsub.s32 0, %v538_v20  ;;  %vm562_vm6 = vcmp.lt.s32.totalorder %v538_v20, 0 }
  0x9e   : > { %v778_v18 = vmin.u32 %v541_v15, %v536_v13 }
  0x9f   : > { %846 = vmatpush1.bf16.msra.mxu1 %v845_v26  ;;  %v552_v19 = vsub.s32 0, %v537_v16  ;;  %v1349_v26 = vadd.s32 %v535_v12, %v534_v21  ;;  %v780_v29 = vmin.u32 %v563_v25, %v538_v20  ;;  %vm551_vm2 = vcmp.lt.s32.totalorder %v537_v16, 0 }
  0xa0   : > { %848 = vmatprep.subr.bf16.mxu1 %v847_v27  ;;  %517 = vmatmul.mubr.f32.gmra.mrb[4].mxu0 %v232_v43  ;;  %v1346_v22 = vmul.u32.u64.low 2863311531, %v778_v18  ;;  %v1347_v23 = vmul.u32.u64.high 2863311531, %v778_v18, %v1346_v22  ;;  %v635_v12 = vstv %s785_s23 }
  0xa1   : > { %776 = vmatprep.mubr.msk.f32.mxu0 %vm338_vm0, %v237_v45  ;;  %v779_v24 = vmin.u32 %v552_v19, %v537_v16  ;;  %v574_v30 = vsub.s32 0, %v1349_v26  ;;  %v1356_v32 = vmul.u32.u64.low 2863311531, %v780_v29  ;;  %v1357_v33 = vmul.u32.u64.high 2863311531, %v780_v29, %v1356_v32 }
  0xa2   : > { %v546_v31 = vshrl.u32 %v1347_v23, 1  ;;  %vm573_vm9 = vcmp.lt.s32.totalorder %v1349_v26, 0 }
  0xa3   : > { %850 = vmatpush1.bf16.msra.mxu1 %v849_v37  ;;  %v1351_v27 = vmul.u32.u64.low 2863311531, %v779_v24  ;;  %v1352_v28 = vmul.u32.u64.high 2863311531, %v779_v24, %v1351_v27  ;;  %v781_v34 = vmin.u32 %v574_v30, %v1349_v26  ;;  %v568_v42 = vshrl.u32 %v1357_v33, 1 }
  0xa4   : > { %852 = vmatprep.subr.bf16.mxu1 %v851_v40  ;;  %523 = vmatmul.mubr.f32.gmra.mrb[6].mxu0 %v236_v54  ;;  %v547_v35 = vmul.u32 3, %v546_v31 }
  0xa5   : > { %v557_v36 = vshrl.u32 %v1352_v28, 1  ;;  %v1361_v37 = vmul.u32.u64.low 2863311531, %v781_v34  ;;  %v1362_v38 = vmul.u32.u64.high 2863311531, %v781_v34, %v1361_v37  ;;  %v569_v46 = vmul.u32 3, %v568_v42 }
  0xa6   : > { %v548_v40 = vsub.s32 %v778_v18, %v547_v35 }
  0xa7   : > { %854 = vmatpush1.bf16.msra.mxu1 %v853_v49  ;;  %v558_v41 = vmul.u32 3, %v557_v36  ;;  %v579_v47 = vshrl.u32 %v1362_v38, 1  ;;  %v570_v50 = vsub.s32 %v780_v29, %v569_v46 }
  0xa8   : > { %856 = vmatprep.subr.bf16.mxu1 %v855_v51  ;;  %v549_v43 = vsub.s32 0, %v548_v40 }
  0xa9   : > { %v559_v44 = vsub.s32 %v779_v24, %v558_v41  ;;  %v580_v51 = vmul.u32 3, %v579_v47  ;;  %v571_v56 = vsub.s32 0, %v570_v50 }
  0xaa   : > { %v550_v45 = vsel %vm540_vm1, %v549_v43, %v548_v40 }
  0xab   : > { %858 = vmatpush1.bf16.msra.mxu1 %v857_v57  ;;  %v560_v49 = vsub.s32 0, %v559_v44  ;;  %vm584_vm3 = vcmp.ne.s32.totalorder %v550_v45, 0  ;;  %vm588_vm4 = vcmp.lt.s32.totalorder %v550_v45, 0  ;;  %v596_v53 = vadd.s32 3, %v550_v45 }
  0xac   : > { %v581_v57 = vsub.s32 %v781_v34, %v580_v51  ;;  %vm592_vm5 = vmand %vm588_vm4, %vm584_vm3  ;;  %v572_v61 = vsel %vm562_vm6, %v571_v56, %v570_v50 }
  0xad   : > { %v561_v55 = vsel %vm551_vm2, %v560_v49, %v559_v44  ;;  %v600_v59 = vsel %vm592_vm5, %v596_v53, %v550_v45  ;;  %vm586_vm12 = vcmp.ne.s32.totalorder %v572_v61, 0  ;;  %vm590_vm13 = vcmp.lt.s32.totalorder %v572_v61, 0 }
  0xae   : > { %416 = vmatmul.mubr.f32.vlgmr.msra.gmra.mrb[0].mxu1 %v222_v60  ;;  %vm585_vm7 = vcmp.ne.s32.totalorder %v561_v55, 0  ;;  %vm589_vm8 = vcmp.lt.s32.totalorder %v561_v55, 0  ;;  %v582_v62 = vsub.s32 0, %v581_v57  ;;  %vm608_vm11 = vcmp.eq.s32.totalorder %v600_v59, 1  ;;  %vm594_vm14 = vmand %vm590_vm13, %vm586_vm12 }
  0xaf   : > { %421 = vmatprep.mubr.f32.mxu1 %v227_v63  ;;  %v597_v63 = vadd.s32 3, %v561_v55  ;;  %vm593_vm10 = vmand %vm589_vm8, %vm585_vm7  ;;  %v598_v6 = vadd.s32 3, %v572_v61  ;;  %vm624_vm15 = vcmp.eq.s32.totalorder %v600_v59, 2 }
  0xb0   : > { %v583_v4 = vsel %vm573_vm9, %v582_v62, %v581_v57 }
  0xb1   : > { %vm587_vm0 = vcmp.ne.s32.totalorder %v583_v4, 0  ;;  %vm591_vm1 = vcmp.lt.s32.totalorder %v583_v4, 0  ;;  %v602_v13 = vsel %vm594_vm14, %v598_v6, %v572_v61  ;;  %v599_v14 = vadd.s32 3, %v583_v4 }
  0xb2   : > { %422 = vmatmul.mubr.f32.gmra.mrb[2].mxu1 %v226_v2  ;;  %v613_v2 = vstv %s782_s20  ;;  %vm595_vm3 = vmand %vm591_vm1, %vm587_vm0  ;;  %vm610_vm5 = vcmp.eq.s32.totalorder %v602_v13, 1  ;;  %vm626_vm6 = vcmp.eq.s32.totalorder %v602_v13, 2 }
  0xb3   : > { %427 = vmatprep.mubr.f32.mxu1 %v231_v5  ;;  %v601_v5 = vsel %vm593_vm10, %v597_v63, %v561_v55  ;;  %v603_v24 = vsel %vm595_vm3, %v599_v14, %v583_v4  ;;  %v616_v31 = vsel %vm610_vm5, %v613_v2, %v605_v1 }
  0xb4   : > { %vm609_vm2 = vcmp.eq.s32.totalorder %v601_v5, 1  ;;  %vm625_vm4 = vcmp.eq.s32.totalorder %v601_v5, 2  ;;  %vm611_vm7 = vcmp.eq.s32.totalorder %v603_v24, 1  ;;  %v632_v40 = vsel %vm626_vm6, %v629_v11, %v616_v31 }
  0xb5   : > { %v615_v19 = vsel %vm609_vm2, %v613_v2, %v605_v1  ;;  %v617_v44 = vsel %vm611_vm7, %v613_v2, %v605_v1  ;;  %vm627_vm8 = vcmp.eq.s32.totalorder %v603_v24, 2 }
  0xb6   : > { %428 = vmatmul.mubr.f32.gmra.mrb[4].mxu1 %v230_v7  ;;  %v631_v27 = vsel %vm625_vm4, %v629_v11, %v615_v19 }
  0xb7   : > { %433 = vmatprep.mubr.f32.mxu1 %v235_v9  ;;  %v614_v9 = vsel %vm608_vm11, %v613_v2, %v605_v1 }
  0xb8   : > { %v630_v16 = vsel %vm624_vm15, %v629_v11, %v614_v9 }
  0xba   : > { %434 = vmatmul.mubr.f32.gmra.mrb[6].mxu1 %v234_v10  ;;  %v619_v10 = vstv %s783_s16 }
  0xbb   : > { %v620_v39 = vsel %vm608_vm11, %v619_v10, %v607_v8  ;;  %v621_v23 = vsel %vm609_vm2, %v619_v10, %v607_v8  ;;  %v622_v36 = vsel %vm610_vm5, %v619_v10, %v607_v8  ;;  %v623_v49 = vsel %vm611_vm7, %v619_v10, %v607_v8 }
  0xbc   : > { %v636_v20 = vsel %vm624_vm15, %v635_v12, %v620_v39  ;;  %v637_v33 = vsel %vm625_vm4, %v635_v12, %v621_v23  ;;  %v638_v47 = vsel %vm626_vm6, %v635_v12, %v622_v36  ;;  %v639_v57 = vsel %vm627_vm8, %v635_v12, %v623_v49 }
 0x16b   : > { %v506_v48 = vpop.f32.mrb[0].mxu0 }
 0x16c   : > { %v508_v52 = vpop.f32.mrb[1].mxu0 }
 0x16f   : > { %v512_v54 = vpop.f32.mrb[2].mxu0 }
 0x170   : > { %v1366_v58 = vpop.f32.mrb[3].mxu0 }
 0x173   : > { %v1368_v60 = vpop.f32.mrb[4].mxu0 }
 0x174   : > { %v1370_v0 = vpop.f32.mrb[5].mxu0 }
 0x177   : > { %v1373_v3 = vpop.f32.mrb[6].mxu0 }
 0x178   : > { %v1375_v7 = vpop.f32.mrb[7].mxu0 }
 0x181   : > { %v417_v15 = vpop.f32.mrb[0].mxu1 }
 0x182   : > { %v507_v17 = vadd.f32 %v506_v48, %v417_v15  ;;  %v419_v18 = vpop.f32.mrb[1].mxu1 }
 0x183   : > { %v509_v21 = vadd.f32 %v508_v52, %v419_v18  ;;  %v633_v52 = vsel %vm627_vm8, %v629_v11, %v617_v44 }
 0x184   : > { %v640_v22 = vmul.f32 %v630_v16, %v507_v17 }
 0x185   : > { %v641_v25 = vmul.f32 %v630_v16, %v509_v21  ;;  %v423_v26 = vpop.f32.mrb[2].mxu1 }
 0x186   : > { %v648_v28 = vadd.f32 %v640_v22, %v636_v20  ;;  %v513_v29 = vadd.f32 %v512_v54, %v423_v26  ;;  %v425_v30 = vpop.f32.mrb[3].mxu1 }
 0x187   : > { %v649_v32 = vadd.f32 %v641_v25, %v636_v20  ;;  %v515_v34 = vadd.f32 %v1366_v58, %v425_v30 }
 0x188   : > { %656 = vst [vmem:[%s1388_s25] sm:$0xff] %v648_v28  ;;  %v642_v35 = vmul.f32 %v631_v27, %v513_v29 }
 0x189   : > { %657 = vst [vmem:[%s1388_s25 + $0x8] sm:$0xff] %v649_v32  ;;  %v643_v37 = vmul.f32 %v631_v27, %v515_v34  ;;  %v429_v38 = vpop.f32.mrb[4].mxu1 }
 0x18a   : > { %v650_v41 = vadd.f32 %v642_v35, %v637_v33  ;;  %v519_v42 = vadd.f32 %v1368_v60, %v429_v38  ;;  %v431_v43 = vpop.f32.mrb[5].mxu1 }
 0x18b   : > { %v651_v46 = vadd.f32 %v643_v37, %v637_v33  ;;  %v521_v45 = vadd.f32 %v1370_v0, %v431_v43 }
 0x18c   : > { %658 = vst [vmem:[%s1388_s25 + $0x10] sm:$0xff] %v650_v41  ;;  %v644_v48 = vmul.f32 %v632_v40, %v519_v42 }
 0x18d   : > { %659 = vst [vmem:[%s1388_s25 + $0x18] sm:$0xff] %v651_v46  ;;  %v645_v50 = vmul.f32 %v632_v40, %v521_v45  ;;  %v435_v51 = vpop.f32.mrb[6].mxu1 }
 0x18e   : > { %v652_v53 = vadd.f32 %v644_v48, %v638_v47  ;;  %v525_v54 = vadd.f32 %v1373_v3, %v435_v51  ;;  %v437_v55 = vpop.f32.mrb[7].mxu1 }
 0x18f   : > { %v653_v56 = vadd.f32 %v645_v50, %v638_v47  ;;  %v527_v58 = vadd.f32 %v1375_v7, %v437_v55 }
 0x190   : > { %660 = vst [vmem:[%s1388_s25 + $0x20] sm:$0xff] %v652_v53  ;;  %v646_v59 = vmul.f32 %v633_v52, %v525_v54 }
 0x191   : > { %661 = vst [vmem:[%s1388_s25 + $0x28] sm:$0xff] %v653_v56  ;;  %v647_v60 = vmul.f32 %v633_v52, %v527_v58 }
 0x192   : > { %v654_v61 = vadd.f32 %v646_v59, %v639_v57 }
 0x193   : > { %v655_v62 = vadd.f32 %v647_v60, %v639_v57 }
 0x194   : > { %662 = vst [vmem:[%s1388_s25 + $0x30] sm:$0xff] %v654_v61 }
 0x195   : > { %663 = vst [vmem:[%s1388_s25 + $0x38] sm:$0xff] %v655_v62 }
 0x196   : > { %1067 = shalt.err (!%p1064_p1)
}
 0x197   : > { %s1068_s8 = scalar_lea.hbm %s1410_s17, 1024  ;;  %s1072_s15 = scalar_lea.hbm %s1460_s4, 3072 }
 0x198   : > { %p1069_p3 = scmp.ne.s32.totalorder %s1410_s17, %s1068_s8  ;;  %p1073_p8 = scmp.lt.u32.totalorder %s1410_s17, %s1460_s4 }
 0x199   : > { %p1074_p4 = scmp.lt.u32.totalorder %s1072_s15, %s1068_s8  ;;  %p1076_p9 = scmp.lt.u32.totalorder %s1068_s8, %s1410_s17 }
 0x19a   : > { %p1070_p5 = pnand %p1069_p3, %p1260_p6 }
 0x19b   : > { %p1075_p10 = por %p1074_p4, %p1073_p8 }
 0x19c   : > { %p1071_p13 = pneg %p1070_p5 }
 0x19d   : > { %p1077_p12 = por %p1076_p9, %p1075_p10 }
 0x19f   : > { %p1078_p0 = pnand %p1077_p12, %p1071_p13 }
 0x1a1   : > { %1081 = shalt.err (!%p1078_p0)
}
 0x1a2   : > { %s1135_s23 = smov 256   ;;  %s1136_s24 = smov 16  }
 0x1a3   : > { %917 = dma.vmem_to_hbm [thread:$0]  (%p1260_p6), %s1412_s27, 1024, %s1410_s17, %s665_s6, %s1135_s23, %s1135_s23, %s1136_s24  }
 0x1a4 PF: > { %p934_p2 = scmp.ge.s32.totalorder %s1126_s5, 2  ;;  %s694_s25 = sand.u32 1, %s1114_s0  }
 0x1a5   : > { %p1476_p7 = scmp.ne.s32.totalorder %s1466_s9, 0  ;;  %s695_s26 = scalar_lea.sflag [#allocation7], %s694_s25 }
 0x1a7   : > { %p928_p11 = pnand %p934_p2, %p1476_p7 }
 0x1a9   : > { %1109 = dma.done.wait (!%p928_p11), %s695_s26, 1024  }
 0x1aa   : > { %1111 = vsyncadd (!%p928_p11), %s695_s26, 4294966272  ;;  %p26_p1 = scmp.ge.s32.totalorder %s1230_s14, 5   ;;  %s1477_s0 = smov %s1118_s1 }
 0x1ab   : > { %s1478_s1 = smov %s1122_s30  ;;  %s1479_s30 = smov %s1256_s29 }
 0x1ac   : > { %s1480_s5 = smov %s1230_s14  ;;  %28 = sbr.rel (!%p26_p1) target bundleno = 28 (0x1c), region = 77 }
 0x1b3   :  { %700 = vsyncpa [#allocation6], 1 }
 0x1b4   :  { %702 = vsyncpa [#allocation6 + $0x1], 1 }
 0x1b5   :  { %703 = vsyncpa [#allocation9], 1 }
 0x1b6   :  { %704 = vsyncpa [#allocation7], 1 }
 0x1b7   :  { %706 = vsyncpa [#allocation7 + $0x1], 1 }

</bundles_post_ra>
